<compile_context>
chip_gen: v5e
topology: v5e:2x2
jax: 0.10.0
libtpu: 0.0.40
codegen_flags: <defaults>
</compile_context>

<pallas_src>
import functools

import jax
import jax.numpy as jnp
from jax.experimental import pallas as pl
from jax.experimental.pallas import tpu as pltpu


def _round_up(x, m):
    return (x + m - 1) // m * m


def _sublane(dtype):
    # Sublane packing of the second-minor dim: 8 (32-bit), 16 (bf16), 32 (8-bit).
    return {4: 8, 2: 16, 1: 32}.get(jnp.dtype(dtype).itemsize, 8)


def _tpu_vmem_capacity():
    try:
        return int(pltpu.get_tpu_info().vmem_capacity_bytes)
    except Exception:
        return 64 << 20  # conservative (v7x-sized) fallback


def _ffn_kernel(x_ref, w1_ref, b1_ref, w2_ref, b2_ref, o_ref, acc_ref, *, mm_dtype):
    # x_ref:  (tm, d_model)
    # w1_ref: (d_model, tf)     b1_ref: (1, tf)
    # w2_ref: (tf, d_model)     b2_ref: (1, d_model)
    # o_ref:  (tm, d_model)     acc_ref: (tm, d_model) f32 scratch
    ff = pl.program_id(1)

    @pl.when(ff == 0)
    def _():
        acc_ref[...] = jnp.zeros_like(acc_ref)

    x = x_ref[...].astype(mm_dtype)
    # linear_1 slice: MXU matmul with f32 accumulation, bias + ReLU in f32.
    h = jnp.dot(x, w1_ref[...].astype(mm_dtype), preferred_element_type=jnp.float32)
    h = jnp.maximum(h + b1_ref[...].astype(jnp.float32), 0.0)
    # dropout == identity (eval mode)

    # linear_2 partial sum over this d_ff slice, accumulated in f32.
    acc_ref[...] += jnp.dot(h.astype(mm_dtype), w2_ref[...].astype(mm_dtype),
                            preferred_element_type=jnp.float32)

    @pl.when(ff == pl.num_programs(1) - 1)
    def _():
        o_ref[...] = (acc_ref[...] + b2_ref[...].astype(jnp.float32)).astype(o_ref.dtype)


@functools.partial(jax.jit, static_argnames=("tm", "tf", "matmul_dtype"))
def feed_forward(x, w1, b1, w2, b2, *, tm=None, tf=None, matmul_dtype=None):
    """x: (batch, seq, d_model) -> (batch, seq, d_model).

    w1: (d_model, d_ff), b1: (d_ff,), w2: (d_ff, d_model), b2: (d_model,).
    matmul_dtype: optional dtype for MXU operands (e.g. jnp.bfloat16 on v5e
      with f32 inputs); accumulation stays f32.  None keeps the input dtype.
    """
    batch, seq, d_model = x.shape
    d_ff = w1.shape[1]
    M = batch * seq

    act_isz = x.dtype.itemsize
    w_isz = w1.dtype.itemsize
    sub = _sublane(x.dtype)

    vmem_cap = _tpu_vmem_capacity()
    big_vmem = vmem_cap >= (100 << 20)       # v5e / v6e (128 MiB); v7x is 64 MiB/TC
    budget = max(vmem_cap - (16 << 20), 16 << 20)

    # Generation-aware default tiles (push tm past the HBM roofline crossover).
    if tm is None:
        tm = 1024 if big_vmem else 512
    if tf is None:
        tf = 1024 if big_vmem else 512

    M_al = _round_up(M, sub)                 # dtype-aware sublane rounding
    dff_al = _round_up(d_ff, 128)
    tm = min(tm, M_al)
    tf = min(tf, dff_al)

    # v7x megacore: make sure the "parallel" row axis has >= 2 tiles so both
    # TensorCores get work; on 1-TC generations keep a single tile to avoid
    # re-streaming W1/W2 from HBM.
    if (not big_vmem) and tm >= M_al and M_al > sub:
        tm = max(sub, _round_up((M_al + 1) // 2, sub))

    # Accurate VMEM working-set estimate (no double hedging; weights use their
    # own itemsize; includes the hidden tile h and its downcast copy).
    def _est(tm_, tf_):
        return (2 * tm_ * d_model * act_isz          # x tiles (double-buffered)
                + 2 * tm_ * d_model * act_isz        # out tiles
                + 2 * d_model * tf_ * w_isz          # W1 slabs
                + 2 * tf_ * d_model * w_isz          # W2 slabs
                + 2 * 8 * tf_ * w_isz                # b1 slabs (sublane-padded)
                + 2 * 8 * d_model * w_isz            # b2
                + tm_ * d_model * 4                  # f32 accumulator scratch
                + tm_ * tf_ * 4                      # h in f32
                + tm_ * tf_ * max(act_isz, w_isz))   # h downcast for 2nd matmul

    # Shrink tiles until the working set fits the per-generation VMEM budget.
    while _est(tm, tf) > budget and (tm > sub or tf > 128):
        if tf >= tm and tf > 128:
            tf = max(128, _round_up(tf // 2, 128))
        elif tm > sub:
            tm = max(sub, _round_up(tm // 2, sub))
        else:
            break

    M_pad = _round_up(M, tm)
    dff_pad = _round_up(d_ff, tf)

    x2 = x.reshape(M, d_model)
    if M_pad != M:
        x2 = jnp.pad(x2, ((0, M_pad - M), (0, 0)))
    if dff_pad != d_ff:
        # Zero-padded d_ff columns/rows contribute exactly 0 to the output.
        w1 = jnp.pad(w1, ((0, 0), (0, dff_pad - d_ff)))
        b1 = jnp.pad(b1, ((0, dff_pad - d_ff),))
        w2 = jnp.pad(w2, ((0, dff_pad - d_ff), (0, 0)))

    b1_2 = b1.reshape(1, dff_pad)
    b2_2 = b2.reshape(1, d_model)

    grid = (M_pad // tm, dff_pad // tf)
    grid_m, grid_f = grid

    vmem_limit = int(min(max(_est(tm, tf) + (4 << 20), 32 << 20),
                         vmem_cap - (8 << 20)))

    # Honest memory cost: W1/W2 are re-read once per row tile.
    bytes_accessed = int(
        x2.size * act_isz
        + grid_m * (w1.size + w2.size) * w_isz
        + grid_m * b1_2.size * b1_2.dtype.itemsize
        + grid_m * grid_f * b2_2.size * b2_2.dtype.itemsize
        + M_pad * d_model * act_isz)
    cost = pl.CostEstimate(
        flops=4 * M_pad * d_model * dff_pad,   # two matmuls, 2*M*K*N each
        transcendentals=0,
        bytes_accessed=bytes_accessed,
    )

    mm_dtype = jnp.dtype(matmul_dtype) if matmul_dtype is not None else jnp.dtype(x.dtype)
    kernel = functools.partial(_ffn_kernel, mm_dtype=mm_dtype)

    out = pl.pallas_call(
        kernel,
        out_shape=jax.ShapeDtypeStruct((M_pad, d_model), x.dtype),
        grid_spec=pltpu.PrefetchScalarGridSpec(
            num_scalar_prefetch=0,
            grid=grid,
            in_specs=[
                pl.BlockSpec((tm, d_model), lambda i, f: (i, 0)),   # x rows
                pl.BlockSpec((d_model, tf), lambda i, f: (0, f)),   # W1 slab
                pl.BlockSpec((1, tf), lambda i, f: (0, f)),         # b1 slab
                pl.BlockSpec((tf, d_model), lambda i, f: (f, 0)),   # W2 slab
                pl.BlockSpec((1, d_model), lambda i, f: (0, 0)),    # b2
            ],
            out_specs=pl.BlockSpec((tm, d_model), lambda i, f: (i, 0)),
            scratch_shapes=[pltpu.VMEM((tm, d_model), jnp.float32)],
        ),
        compiler_params=pltpu.CompilerParams(
            dimension_semantics=("parallel", "arbitrary"),
            vmem_limit_bytes=vmem_limit,
        ),
        cost_estimate=cost,
    )(x2, w1, b1_2, w2, b2_2)

    return out[:M].reshape(batch, seq, d_model)


if __name__ == "__main__":
    # Small shapes consistent with the module (scaled-down d_model / d_ff).
    batch, seq = 2, 8
    d_model, d_ff = 128, 256

    key = jax.random.PRNGKey(0)
    kx, kw1, kb1, kw2, kb2 = jax.random.split(key, 5)

    x = jax.random.normal(kx, (batch, seq, d_model), dtype=jnp.float32)

    # torch.nn.Linear weights are (out_features, in_features); we keep them
    # pre-transposed as (in_features, out_features) for the kernel.
    w1 = jax.random.normal(kw1, (d_model, d_ff), dtype=jnp.float32) * 0.02
    b1 = jax.random.normal(kb1, (d_ff,), dtype=jnp.float32) * 0.02
    w2 = jax.random.normal(kw2, (d_ff, d_model), dtype=jnp.float32) * 0.02
    b2 = jax.random.normal(kb2, (d_model,), dtype=jnp.float32) * 0.02

    out = feed_forward(x, w1, b1, w2, b2)
    jax.block_until_ready(out)

    # Pure-JAX reference check (eval-mode dropout == identity).
    ref = jnp.maximum(x @ w1 + b1, 0.0) @ w2 + b2
    assert out.shape == (batch, seq, d_model)
    assert jnp.allclose(out, ref, atol=1e-4, rtol=1e-4)

    print("KERNEL_OK")
</pallas_src>

<mosaic_0001>
module attributes {stable_mosaic.version = 11 : i64} {
  func.func @_ffn_kernel(%arg0: i32, %arg1: i32, %arg2: memref<8x128xf32, #tpu.memory_space<vmem>>, %arg3: memref<128x256xf32, #tpu.memory_space<vmem>>, %arg4: memref<1x256xf32, #tpu.memory_space<vmem>>, %arg5: memref<256x128xf32, #tpu.memory_space<vmem>>, %arg6: memref<1x128xf32, #tpu.memory_space<vmem>>, %arg7: memref<8x128xf32, #tpu.memory_space<vmem>>, %arg8: memref<8x128xf32, #tpu.memory_space<vmem>>) attributes {dimension_semantics = [#tpu.dimension_semantics<parallel>, #tpu.dimension_semantics<arbitrary>], iteration_bounds = array<i64: 2, 1>, scalar_prefetch = 0 : i64, scratch_operands = 1 : i64, tpu.core_type = #tpu.core_type<tc>, window_params = [{transform_indices = @transform_0, window_bounds = array<i64: 8, 128>}, {transform_indices = @transform_1, window_bounds = array<i64: 128, 256>}, {transform_indices = @transform_2, window_bounds = array<i64: 1, 256>}, {transform_indices = @transform_3, window_bounds = array<i64: 256, 128>}, {pipeline_mode = #tpu.pipeline_mode<synchronous>, transform_indices = @transform_4, window_bounds = array<i64: 1, 128>}, {transform_indices = @transform_5, window_bounds = array<i64: 8, 128>}]} {
    %c0_i32 = arith.constant 0 : i32
    %0 = arith.cmpi eq, %arg1, %c0_i32 : i32
    %1 = arith.extui %0 : i1 to i32
    %c0_i32_0 = arith.constant 0 : i32
    %2 = arith.cmpi ne, %1, %c0_i32_0 : i32
    scf.if %2 {
      %cst_16 = arith.constant 0.000000e+00 : f32
      %19 = vector.broadcast %cst_16 : f32 to vector<8x128xf32>
      %c0_17 = arith.constant 0 : index
      %c0_18 = arith.constant 0 : index
      %20 = vector.load %arg8[%c0_17, %c0_18] : memref<8x128xf32, #tpu.memory_space<vmem>>, vector<8x128xf32>
      tpu.vector_store %arg8[%c0_17, %c0_18], %19 {strides = array<i32>} : memref<8x128xf32, #tpu.memory_space<vmem>>, vector<8x128xf32>,
    } else {
    }
    %c0 = arith.constant 0 : index
    %c0_1 = arith.constant 0 : index
    %3 = vector.load %arg2[%c0, %c0_1] : memref<8x128xf32, #tpu.memory_space<vmem>>, vector<8x128xf32>
    %c0_2 = arith.constant 0 : index
    %c0_3 = arith.constant 0 : index
    %4 = vector.load %arg3[%c0_2, %c0_3] : memref<128x256xf32, #tpu.memory_space<vmem>>, vector<128x256xf32>
    %cst = arith.constant dense<0.000000e+00> : vector<8x256xf32>
    %5 = tpu.matmul %3, %4, %cst {dimension_numbers = #tpu.dot_dimension_numbers<[1], [0], [0], [1], [0, 0, 1, 1], [], []>} : vector<8x128xf32>, vector<128x256xf32>, vector<8x256xf32> -> vector<8x256xf32>
    %c0_4 = arith.constant 0 : index
    %c0_5 = arith.constant 0 : index
    %6 = vector.load %arg4[%c0_4, %c0_5] : memref<1x256xf32, #tpu.memory_space<vmem>>, vector<1x256xf32>
    %7 = vector.broadcast %6 : vector<1x256xf32> to vector<8x256xf32>
    %8 = arith.addf %5, %7 : vector<8x256xf32>
    %cst_6 = arith.constant 0.000000e+00 : f32
    %9 = vector.broadcast %cst_6 : f32 to vector<8x256xf32>
    %10 = arith.maximumf %8, %9 : vector<8x256xf32>
    %c0_7 = arith.constant 0 : index
    %c0_8 = arith.constant 0 : index
    %11 = vector.load %arg8[%c0_7, %c0_8] : memref<8x128xf32, #tpu.memory_space<vmem>>, vector<8x128xf32>
    %c0_9 = arith.constant 0 : index
    %c0_10 = arith.constant 0 : index
    %12 = vector.load %arg5[%c0_9, %c0_10] : memref<256x128xf32, #tpu.memory_space<vmem>>, vector<256x128xf32>
    %cst_11 = arith.constant dense<0.000000e+00> : vector<8x128xf32>
    %13 = tpu.matmul %10, %12, %cst_11 {dimension_numbers = #tpu.dot_dimension_numbers<[1], [0], [0], [1], [0, 0, 1, 1], [], []>} : vector<8x256xf32>, vector<256x128xf32>, vector<8x128xf32> -> vector<8x128xf32>
    %14 = arith.addf %11, %13 : vector<8x128xf32>
    %c0_12 = arith.constant 0 : index
    %c0_13 = arith.constant 0 : index
    %15 = vector.load %arg8[%c0_12, %c0_13] : memref<8x128xf32, #tpu.memory_space<vmem>>, vector<8x128xf32>
    tpu.vector_store %arg8[%c0_12, %c0_13], %14 {strides = array<i32>} : memref<8x128xf32, #tpu.memory_space<vmem>>, vector<8x128xf32>,
    %c0_i32_14 = arith.constant 0 : i32
    %16 = arith.cmpi eq, %arg1, %c0_i32_14 : i32
    %17 = arith.extui %16 : i1 to i32
    %c0_i32_15 = arith.constant 0 : i32
    %18 = arith.cmpi ne, %17, %c0_i32_15 : i32
    scf.if %18 {
      %c0_16 = arith.constant 0 : index
      %c0_17 = arith.constant 0 : index
      %19 = vector.load %arg8[%c0_16, %c0_17] : memref<8x128xf32, #tpu.memory_space<vmem>>, vector<8x128xf32>
      %c0_18 = arith.constant 0 : index
      %c0_19 = arith.constant 0 : index
      %20 = vector.load %arg6[%c0_18, %c0_19] : memref<1x128xf32, #tpu.memory_space<vmem>>, vector<1x128xf32>
      %21 = vector.broadcast %20 : vector<1x128xf32> to vector<8x128xf32>
      %22 = arith.addf %19, %21 : vector<8x128xf32>
      %c0_20 = arith.constant 0 : index
      %c0_21 = arith.constant 0 : index
      %23 = vector.load %arg7[%c0_20, %c0_21] : memref<8x128xf32, #tpu.memory_space<vmem>>, vector<8x128xf32>
      tpu.vector_store %arg7[%c0_20, %c0_21], %22 {strides = array<i32>} : memref<8x128xf32, #tpu.memory_space<vmem>>, vector<8x128xf32>,
    } else {
    }
    return
  }
  func.func @transform_0(%arg0: i32, %arg1: i32) -> (i32, i32) {
    %c0_i32 = arith.constant 0 : i32
    %c0_i32_0 = arith.constant 0 : i32
    return %arg0, %c0_i32 : i32, i32
  }
  func.func @transform_1(%arg0: i32, %arg1: i32) -> (i32, i32) {
    %c0_i32 = arith.constant 0 : i32
    %c0_i32_0 = arith.constant 0 : i32
    return %c0_i32, %arg1 : i32, i32
  }
  func.func @transform_2(%arg0: i32, %arg1: i32) -> (i32, i32) {
    %c0_i32 = arith.constant 0 : i32
    %c0_i32_0 = arith.constant 0 : i32
    return %c0_i32, %arg1 : i32, i32
  }
  func.func @transform_3(%arg0: i32, %arg1: i32) -> (i32, i32) {
    %c0_i32 = arith.constant 0 : i32
    %c0_i32_0 = arith.constant 0 : i32
    return %arg1, %c0_i32 : i32, i32
  }
  func.func @transform_4(%arg0: i32, %arg1: i32) -> (i32, i32) {
    %c0_i32 = arith.constant 0 : i32
    %c0_i32_0 = arith.constant 0 : i32
    %c0_i32_1 = arith.constant 0 : i32
    return %c0_i32, %c0_i32_0 : i32, i32
  }
  func.func @transform_5(%arg0: i32, %arg1: i32) -> (i32, i32) {
    %c0_i32 = arith.constant 0 : i32
    %c0_i32_0 = arith.constant 0 : i32
    return %arg0, %c0_i32 : i32, i32
  }
}

</mosaic_0001>

<bundles_post_ra>
// kernel: feed_forward.1
= control target key start
LH: loop header
LB: loop body
LE: loop exit
PB: predicated region body
PF: predicated region fallthrough
CT: control target
= control target key end

     0   :  { %10 = vsyncpa [#allocation4], 0  ;;  %s1101_s0 = inlined_call_operand.hbm [shape: f32[16,128], index: 0, kind: input, shape index: {}]   ;;  %s1102_s1 = inlined_call_operand.hbm [shape: f32[128,256], index: 1, kind: input, shape index: {}]   ;;  %s1103_s2 = inlined_call_operand.vmem [shape: f32[1,256], index: 2, kind: input, shape index: {}]   ;;  %s1104_s3 = inlined_call_operand.hbm [shape: f32[256,128], index: 3, kind: input, shape index: {}]   ;;  %s1105_s4 = inlined_call_operand.vmem [shape: f32[1,128], index: 4, kind: input, shape index: {}]   ;;  %s1106_s5 = inlined_call_operand.hbm [shape: f32[16,128], index: 5, kind: output, shape index: {}]  }
   0x1   :  { %12 = vsyncpa [#allocation4 + $0x1], 0 }
   0x2   :  { %13 = vsyncpa [#allocation7], 0 }
   0x3   :  { %14 = vsyncpa [#allocation5], 0 }
   0x4   :  { %16 = vsyncpa [#allocation5 + $0x1], 0  ;;  %s944_s18 = smov 0   ;;  %s946_s19 = smov 0  }
   0x5   :  { %s948_s20 = smov 0   ;;  %s950_s21 = smov 0  }
   0x6   :  { %s952_s22 = smov 0   ;;  %s954_s23 = smov 0  }
   0x7 LB: > { %s624_s24 = sadd.s32 4294967295, %s906_s23   ;;  %p626_p0 = scmp.ge.s32.totalorder %s906_s23, 1  ;;  %s906_s23 = sphi %s954_s23, %s22_s23   ;;  %s902_s22 = sphi %s952_s22, %s1116_s22   ;;  %s898_s21 = sphi %s950_s21, %s1115_s21   ;;  %s894_s20 = sphi %s948_s20, %s1114_s20   ;;  %s890_s19 = sphi %s946_s19, %s1113_s19   ;;  %s886_s18 = sphi %s944_s18, %s1112_s18  }
   0x8   : > { %p978_p1 = scmp.eq.s32.totalorder %s624_s24, 0  ;;  %p190_p2 = scmp.lt.s32.totalorder %s906_s23, 3 }
   0x9   : > { %s204_s28 = sshll.u32 %s1102_s1, 4  ;;  %s908_s30 = smov [#allocation6]   ;;  %s205_s28 = int_to_ptr.hbm [resolvable:$true] %s204_s28 }
   0xa   : > { %p986_p3 = pnand %p626_p0, %p190_p2  ;;  %s206_s6 = sshll.u32 %s908_s30, 4  ;;  %s207_s6 = int_to_ptr.vmem [resolvable:$true] %s206_s6 }
   0xb   : > { %p630_p6 = scmp.ge.s32.totalorder %s906_s23, 2  ;;  %s229_s9 = sshll.u32 %s1104_s3, 4  ;;  %s230_s9 = int_to_ptr.hbm [resolvable:$true] %s229_s9 }
   0xc   : > { %p654_p4 = pneg %p986_p3  ;;  %s909_s10 = smov 256  }
   0xd   : > { %s910_s11 = smov 16   ;;  %s911_s12 = smov [#allocation8]  }
   0xe   : > { %p655_p5 = pnand %p654_p4, %p978_p1  ;;  %s231_s13 = sshll.u32 %s911_s12, 4  ;;  %s232_s13 = int_to_ptr.vmem [resolvable:$true] %s231_s13 }
   0xf   : > { %s912_s14 = smov 128   ;;  %s913_s15 = smov 8  }
  0x10   : > { %657 = dma.hbm_to_vmem [thread:$0]  (!%p655_p5), %s205_s28, 4096, %s207_s6, [#allocation7], %s909_s10, %s909_s10, %s910_s11  }
  0x11   : > { %660 = dma.hbm_to_vmem [thread:$0]  (!%p655_p5), %s230_s9, 4096, %s232_s13, [#allocation7], %s912_s14, %s912_s14, %s913_s15  }
  0x12   : > { %s34_s16 = sadd.s32 1, %s902_s22  ;;  %s625_s17 = sadd.s32 4294967294, %s906_s23  }
  0x13   : > { %p36_p7 = scmp.ge.s32.totalorder %s34_s16, 2  ;;  %s41_s26 = sadd.s32 1, %s894_s20 }
  0x14   : > { %p48_p8 = scmp.ne.s32.totalorder %s894_s20, %s890_s19  ;;  %p49_p9 = scmp.eq.s32.totalorder %s906_s23, 0 }
  0x15   : > { %s1118_s16 = smov (%p36_p7, %s34_s16), 0  ;;  %p54_p10 = scmp.ne.s32.totalorder %s890_s19, %s886_s18 }
  0x16   : > { %s38_s27 = ssub.s32 %s902_s22, %s1118_s16  ;;  %p177_p11 = scmp.eq.s32.totalorder %s624_s24, 1 }
  0x17   : > { %p39_p12 = scmp.eq.s32.totalorder %s38_s27, 0  ;;  %p1014_p13 = por %p978_p1, %p54_p10 }
  0x18   : > { %p1018_p0 = por %p177_p11, %p48_p8  ;;  %p183_p2 = scmp.eq.s32.totalorder %s625_s17, 1 }
  0x19   : > { %s1023_s6 = scalar_select %p39_p12, %s894_s20, %s41_s26  }
  0x1a   : > { %p50_p4 = por %p49_p9, %p48_p8  ;;  %p1025_p5 = por %p183_p2, %p54_p10 }
  0x1b   : > { %s248_s8 = sand.u32 1, %s894_s20   ;;  %s632_s24 = sshll.u32 %s902_s22, 3 }
  0x1c   : > { %p671_p7 = scmp.lt.s32.totalorder %s906_s23, 2  ;;  %s631_s9 = sshll.u32 %s248_s8, 3 }
  0x1d   : > { %s256_s12 = scalar_lea.hbm %s1101_s0, %s632_s24  ;;  %s252_s14 = scalar_lea.vmem [#allocation3], %s631_s9 }
  0x1e   : > { %s258_s13 = sshll.u32 %s256_s12, 4  ;;  %s260_s15 = sshll.u32 %s252_s14, 4  ;;  %s259_s13 = int_to_ptr.hbm [resolvable:$true] %s258_s13  ;;  %s261_s15 = int_to_ptr.vmem [resolvable:$true] %s260_s15 }
  0x1f   : > { %p662_p11 = pnand %p671_p7, %p50_p4  ;;  %s249_s17 = scalar_lea.sflag [#allocation4], %s248_s8 }
  0x20   : > { %269 = sbr.rel (%p986_p3) target bundleno = 341 (0x155), region = 40  ;;  %s1038_s26 = sand.u32 (!%p986_p3), 1, %s890_s19  }
  0x21   : > { %664 = dma.hbm_to_vmem [thread:$0]  (!%p662_p11), %s259_s13, 128, %s261_s15, %s249_s17  }
  0x22   : > { %s634_s27 = sshll.u32 (!%p986_p3), %s1038_s26, 3  ;;  %s272_s24 = scalar_lea.sflag (!%p986_p3), [#allocation4], %s1038_s26 }
  0x23   : > { %s1044_s9 = scalar_lea.vmem (!%p986_p3), [#allocation3], %s634_s27 }
  0x25   : > { %873 = dma.done.wait (%p1014_p13), %s272_s24, 128  }
  0x26   : > { %875 = vsyncadd (%p1014_p13), %s272_s24, 4294967168 }
  0x27   : > { %877 = dma.done.wait (%p978_p1), [#allocation7], 8192  }
  0x28   : > { %879 = vsyncadd (%p978_p1), [#allocation7], 4294959104  ;;  %v360_v0 = vld [vmem:[#allocation6 + $0xf0] sm:$0xff]  ;;  %v361_v1 = vld [vmem:[#allocation6 + $0xf8] sm:$0xff]  ;;  %s639_s28 = sshll.u32 %s898_s21, 3  ;;  %s316_s14 = scalar_lea.vmem [#allocation9], %s634_s27 }
  0x29   : > { %v358_v2 = vld [vmem:[#allocation6 + $0xe0] sm:$0xff]  ;;  %368 = vmatpush.msra.mxu0 %v360_v0  ;;  %388 = vmatpush.msra.mxu1 %v361_v1  ;;  %v359_v3 = vld [vmem:[#allocation6 + $0xe8] sm:$0xff]  ;;  %v356_v4 = vld [vmem:[#allocation6 + $0xd0] sm:$0xff]  ;;  %s506_s11 = scalar_lea.hbm %s1106_s5, %s639_s28  ;;  %s508_s15 = sshll.u32 %s316_s14, 4  ;;  %s509_s15 = int_to_ptr.vmem [resolvable:$true] %s508_s15 }
  0x2a   : > { %v357_v5 = vld [vmem:[#allocation6 + $0xd8] sm:$0xff]  ;;  %v354_v6 = vld [vmem:[#allocation6 + $0xc0] sm:$0xff]  ;;  %v355_v7 = vld [vmem:[#allocation6 + $0xc8] sm:$0xff]  ;;  %s510_s17 = sshll.u32 %s506_s11, 4  ;;  %s496_s21 = scalar_lea.sflag [#allocation5], %s1038_s26  ;;  %s511_s17 = int_to_ptr.hbm [resolvable:$true] %s510_s17 }
  0x2b   : > { %369 = vmatpush.msra.mxu0 %v358_v2  ;;  %389 = vmatpush.msra.mxu1 %v359_v3  ;;  %v352_v8 = vld [vmem:[#allocation6 + $0xb0] sm:$0xff]  ;;  %v353_v9 = vld [vmem:[#allocation6 + $0xb8] sm:$0xff]  ;;  %v350_v10 = vld [vmem:[#allocation6 + $0xa0] sm:$0xff]  ;;  %s834_s24 = sshra.s32 %s511_s17, 4  ;;  %s840_s28 = scalar_lea.hbm %s1106_s5, 16  ;;  %s835_s24 = int_to_ptr.hbm [resolvable:$true] %s834_s24 }
  0x2c   : > { %v351_v11 = vld [vmem:[#allocation6 + $0xa8] sm:$0xff]  ;;  %v348_v12 = vld [vmem:[#allocation6 + $0x90] sm:$0xff]  ;;  %v349_v13 = vld [vmem:[#allocation6 + $0x98] sm:$0xff]  ;;  %p841_p9 = scmp.lt.s32.totalorder %s835_s24, %s1106_s5 }
  0x2d   : > { %370 = vmatpush.msra.mxu0 %v356_v4  ;;  %390 = vmatpush.msra.mxu1 %v357_v5  ;;  %v426_v14 = vld [vmem:[#allocation8 + $0x78] sm:$0xff]  ;;  %v425_v16 = vld [vmem:[#allocation8 + $0x70] sm:$0xff]  ;;  %v346_v17 = vld [vmem:[#allocation6 + $0x80] sm:$0xff] }
  0x2e   : > { %v442_v15 = vld [vmem:[#allocation8 + $0xf8] sm:$0xff]  ;;  %v347_v18 = vld [vmem:[#allocation6 + $0x88] sm:$0xff]  ;;  %443 = vmatpush.msra.mxu2 %v426_v14  ;;  %v441_v19 = vld [vmem:[#allocation8 + $0xf0] sm:$0xff] }
  0x2f   : > { %371 = vmatpush.msra.mxu0 %v354_v6  ;;  %391 = vmatpush.msra.mxu1 %v355_v7  ;;  %v424_v20 = vld [vmem:[#allocation8 + $0x68] sm:$0xff]  ;;  %v344_v22 = vld [vmem:[#allocation6 + $0x70] sm:$0xff]  ;;  %v345_v23 = vld [vmem:[#allocation6 + $0x78] sm:$0xff] }
  0x30   : > { %463 = vmatpush.msra.mxu3 %v442_v15  ;;  %v440_v21 = vld [vmem:[#allocation8 + $0xe8] sm:$0xff]  ;;  %444 = vmatpush.msra.mxu2 %v425_v16  ;;  %v423_v24 = vld [vmem:[#allocation8 + $0x60] sm:$0xff]  ;;  %v422_v28 = vld [vmem:[#allocation8 + $0x58] sm:$0xff] }
  0x31   : > { %372 = vmatpush.msra.mxu0 %v352_v8  ;;  %392 = vmatpush.msra.mxu1 %v353_v9  ;;  %v439_v25 = vld [vmem:[#allocation8 + $0xe0] sm:$0xff]  ;;  %v343_v27 = vld [vmem:[#allocation6 + $0x68] sm:$0xff]  ;;  %v438_v29 = vld [vmem:[#allocation8 + $0xd8] sm:$0xff] }
  0x32   : > { %464 = vmatpush.msra.mxu3 %v441_v19  ;;  %v342_v26 = vld [vmem:[#allocation6 + $0x60] sm:$0xff]  ;;  %445 = vmatpush.msra.mxu2 %v424_v20  ;;  %v340_v30 = vld [vmem:[#allocation6 + $0x50] sm:$0xff]  ;;  %v341_v31 = vld [vmem:[#allocation6 + $0x58] sm:$0xff] }
  0x33   : > { %373 = vmatpush.msra.mxu0 %v350_v10  ;;  %393 = vmatpush.msra.mxu1 %v351_v11  ;;  %v421_v32 = vld [vmem:[#allocation8 + $0x50] sm:$0xff]  ;;  %v338_v34 = vld [vmem:[#allocation6 + $0x40] sm:$0xff]  ;;  %v339_v35 = vld [vmem:[#allocation6 + $0x48] sm:$0xff] }
  0x34   : > { %465 = vmatpush.msra.mxu3 %v440_v21  ;;  %446 = vmatpush.msra.mxu2 %v423_v24  ;;  %v437_v33 = vld [vmem:[#allocation8 + $0xd0] sm:$0xff]  ;;  %v420_v36 = vld [vmem:[#allocation8 + $0x48] sm:$0xff]  ;;  %v337_v39 = vld [vmem:[#allocation6 + $0x38] sm:$0xff] }
  0x35   : > { %374 = vmatpush.msra.mxu0 %v348_v12  ;;  %394 = vmatpush.msra.mxu1 %v349_v13  ;;  %v436_v37 = vld [vmem:[#allocation8 + $0xc8] sm:$0xff]  ;;  %v336_v38 = vld [vmem:[#allocation6 + $0x30] sm:$0xff]  ;;  %v419_v40 = vld [vmem:[#allocation8 + $0x40] sm:$0xff] }
  0x36   : > { %466 = vmatpush.msra.mxu3 %v439_v25  ;;  %447 = vmatpush.msra.mxu2 %v422_v28  ;;  %v435_v41 = vld [vmem:[#allocation8 + $0xc0] sm:$0xff]  ;;  %v335_v43 = vld [vmem:[#allocation6 + $0x28] sm:$0xff]  ;;  %v418_v44 = vld [vmem:[#allocation8 + $0x38] sm:$0xff] }
  0x37   : > { %375 = vmatpush.msra.mxu0 %v346_v17  ;;  %395 = vmatpush.msra.mxu1 %v347_v18  ;;  %v334_v42 = vld [vmem:[#allocation6 + $0x20] sm:$0xff]  ;;  %v434_v45 = vld [vmem:[#allocation8 + $0xb8] sm:$0xff]  ;;  %v332_v46 = vld [vmem:[#allocation6 + $0x10] sm:$0xff] }
  0x38   : > { %467 = vmatpush.msra.mxu3 %v438_v29  ;;  %448 = vmatpush.msra.mxu2 %v421_v32  ;;  %v333_v47 = vld [vmem:[#allocation6 + $0x18] sm:$0xff]  ;;  %v417_v48 = vld [vmem:[#allocation8 + $0x30] sm:$0xff]  ;;  %v330_v50 = vld [vmem:[#allocation6] sm:$0xff] }
  0x39   : > { %376 = vmatpush.msra.mxu0 %v344_v22  ;;  %396 = vmatpush.msra.mxu1 %v345_v23  ;;  %v433_v49 = vld [vmem:[#allocation8 + $0xb0] sm:$0xff]  ;;  %v331_v51 = vld [vmem:[#allocation6 + $0x8] sm:$0xff]  ;;  %v415_v55 = vld [vmem:[#allocation8 + $0x20] sm:$0xff] }
  0x3a   : > { %468 = vmatpush.msra.mxu3 %v437_v33  ;;  %449 = vmatpush.msra.mxu2 %v420_v36  ;;  %v329_v52 = vld [vmem:[%s1044_s9] sm:$0xff]  ;;  %v416_v53 = vld [vmem:[#allocation8 + $0x28] sm:$0xff]  ;;  %v431_v56 = vld [vmem:[#allocation8 + $0xa0] sm:$0xff]  ;;  %s836_s9 = scalar_lea.hbm %s835_s24, 8 }
  0x3b   : > { %377 = vmatpush.msra.mxu0 %v342_v26  ;;  %397 = vmatpush.msra.mxu1 %v343_v27  ;;  %v432_v54 = vld [vmem:[#allocation8 + $0xa8] sm:$0xff]  ;;  %v414_v57 = vld [vmem:[#allocation8 + $0x18] sm:$0xff]  ;;  %v413_v59 = vld [vmem:[#allocation8 + $0x10] sm:$0xff]  ;;  %p837_p1 = scmp.ne.s32.totalorder %s835_s24, %s836_s9  ;;  %p842_p10 = scmp.lt.s32.totalorder %s840_s28, %s836_s9 }
  0x3c   : > { %469 = vmatpush.msra.mxu3 %v436_v37  ;;  %450 = vmatpush.msra.mxu2 %v419_v40  ;;  %v430_v58 = vld [vmem:[#allocation8 + $0x98] sm:$0xff]  ;;  %v429_v60 = vld [vmem:[#allocation8 + $0x90] sm:$0xff]  ;;  %v412_v61 = vld [vmem:[#allocation8 + $0x8] sm:$0xff] }
  0x3d   : > { %378 = vmatpush.msra.mxu0 %v340_v30  ;;  %398 = vmatpush.msra.mxu1 %v341_v31  ;;  %v428_v62 = vld [vmem:[#allocation8 + $0x88] sm:$0xff]  ;;  %v411_v63 = vld [vmem:[#allocation8] sm:$0xff]  ;;  %v362_v1 = vld [vmem:[%s1103_s2] sm:$0x3]  ;;  %p838_p3 = pnand %p837_p1, %p1018_p0  ;;  %p843_p12 = por %p842_p10, %p841_p9 }
  0x3e   : > { %470 = vmatpush.msra.mxu3 %v435_v41  ;;  %451 = vmatpush.msra.mxu2 %v418_v44  ;;  %v427_v0 = vld [vmem:[#allocation8 + $0x80] sm:$0xff]  ;;  %v364_v2 = vperm.slane %v362_v1, 0  ;;  %v365_v3 = vperm.slane %v362_v1, 1  ;;  %v729_v10 = vld [vmem:[%s1105_s4] ss:$0 sm:$0xff] }
  0x3f   : > { %379 = vmatpush.msra.mxu0 %v338_v34  ;;  %399 = vmatpush.msra.mxu1 %v339_v35  ;;  %p839_p8 = pneg %p838_p3 }
  0x40   : > { %471 = vmatpush.msra.mxu3 %v434_v45  ;;  %452 = vmatpush.msra.mxu2 %v417_v48 }
  0x41   : > { %380 = vmatpush.msra.mxu0 %v336_v38  ;;  %400 = vmatpush.msra.mxu1 %v337_v39  ;;  %p844_p13 = pnand %p843_p12, %p839_p8 }
  0x42   : > { %472 = vmatpush.msra.mxu3 %v433_v49  ;;  %453 = vmatpush.msra.mxu2 %v416_v53 }
  0x43   : > { %381 = vmatpush.msra.mxu0 %v334_v42  ;;  %401 = vmatpush.msra.mxu1 %v335_v43 }
  0x44   : > { %473 = vmatpush.msra.mxu3 %v432_v54  ;;  %454 = vmatpush.msra.mxu2 %v415_v55 }
  0x45   : > { %382 = vmatpush.msra.mxu0 %v332_v46  ;;  %402 = vmatpush.msra.mxu1 %v333_v47 }
  0x46   : > { %474 = vmatpush.msra.mxu3 %v431_v56  ;;  %455 = vmatpush.msra.mxu2 %v414_v57 }
  0x47   : > { %383 = vmatpush.msra.mxu0 %v330_v50  ;;  %403 = vmatpush.msra.mxu1 %v331_v51 }
  0x48   : > { %384 = vmatmul.f32.vlgmr.msra.gmra.mxu0 %v329_v52  ;;  %404 = vmatmul.f32.vlgmr.msra.gmra.mxu1 %v329_v52 }
  0x49   : > { %475 = vmatpush.msra.mxu3 %v430_v58  ;;  %456 = vmatpush.msra.mxu2 %v413_v59 }
  0x4b   : > { %476 = vmatpush.msra.mxu3 %v429_v60  ;;  %457 = vmatpush.msra.mxu2 %v412_v61 }
  0x4d   : > { %477 = vmatpush.msra.mxu3 %v428_v62  ;;  %458 = vmatpush.msra.mxu2 %v411_v63 }
  0x4f   : > { %478 = vmatpush.msra.mxu3 %v427_v0 }
  0xc5   : > { %v385_v4 = vpop.f32.mrf.mxu0  ;;  %v405_v5 = vpop.f32.mrf.mxu1 }
  0xc6   : > { %v386_v6 = vadd.f32 %v385_v4, %v364_v2  ;;  %v406_v7 = vadd.f32 %v405_v5, %v365_v3 }
  0xc8   : > { %v408_v8 = vmax.f32 %v386_v6, 0.0  ;;  %v409_v9 = vmax.f32 %v406_v7, 0.0 }
  0xca   : > { %459 = vmatmul.f32.vlgmr.msra.gmra.mxu2 %v408_v8  ;;  %479 = vmatmul.f32.vlgmr.msra.gmra.mxu3 %v409_v9 }
 0x14d   : > { %v460_v11 = vpop.f32.mrf.mxu2  ;;  %v480_v12 = vpop.f32.mrf.mxu3 }
 0x14e   : > { %v481_v13 = vadd.f32 %v480_v12, %v460_v11 }
 0x150   : > { %v493_v14 = vadd.f32 %v729_v10, %v481_v13 }
 0x152   : > { %494 = vst [vmem:[%s316_s14] sm:$0xff] %v493_v14 }
 0x153   : > { %847 = shalt.err (!%p844_p13)
}
 0x154   : > { %652 = dma.vmem_to_hbm [thread:$0]  (%p1018_p0), %s509_s15, 128, %s511_s17, %s496_s21  }
 0x155 PF: > { %s522_s26 = sand.u32 1, %s886_s18   ;;  %p666_p2 = pnand %p630_p6, %p1025_p5 }
 0x156   : > { %s523_s10 = scalar_lea.sflag [#allocation5], %s522_s26 }
 0x157   : > { %p667_p4 = pneg %p666_p2 }
 0x159   : > { %881 = dma.done.wait (%p667_p4), %s523_s10, 128  }
 0x15a   : > { %883 = vsyncadd (%p667_p4), %s523_s10, 4294967168  ;;  %s22_s23 = sadd.s32 1, %s906_s23   ;;  %s1112_s18 = smov %s890_s19 }
 0x15b   : > { %p19_p7 = scmp.ge.s32.totalorder %s22_s23, 4   ;;  %s1113_s19 = smov %s894_s20 }
 0x15c   : > { %s1114_s20 = smov %s1023_s6  ;;  %s1115_s21 = smov %s902_s22 }
 0x15d   : > { %s1116_s22 = smov %s1118_s16  ;;  %21 = sbr.rel (!%p19_p7) target bundleno = 7 (0x7), region = 106 }
 0x162   :  { %529 = vsyncpa [#allocation4], 1 }
 0x163   :  { %531 = vsyncpa [#allocation4 + $0x1], 1 }
 0x164   :  { %532 = vsyncpa [#allocation7], 1 }
 0x165   :  { %533 = vsyncpa [#allocation5], 1 }
 0x166   :  { %535 = vsyncpa [#allocation5 + $0x1], 1 }

</bundles_post_ra>
